<compile_context>
chip_gen: v7x
topology: tpu7x:2x2x1
jax: 0.10.0
libtpu: 0.0.40
codegen_flags: <defaults>
</compile_context>

<pallas_src>
import functools

import jax
import jax.numpy as jnp
from jax.experimental import pallas as pl
from jax.experimental.pallas import tpu as pltpu

LANE = 128          # vreg lane width; hidden / head widths are zero-padded to this
HIDDEN = 64         # module's hidden size
BIAS_ROWS = 8       # one 8x128 sublane tile: row 0 = fc2 bias, row 1 = actor|critic bias
MAX_BLOCK_B = 4096  # 2*(x + out) tiles at 4096 rows ~= 4.4 MiB -> safe on every generation


def _in_pad(input_dim):
    """Input features padded to a sublane multiple, +1 spare lane for the folded fc1 bias."""
    return max(8, -(-(input_dim + 1) // 8) * 8)


def actor_critic_kernel(x_ref, p_ref, out_ref, *, out_dim, in_pad):
    """x_ref:  (block_b, in_pad) f32; last lane carries a constant 1.0 (folded fc1 bias).
    p_ref:  (in_pad + 2*128 + 8, 128) f32 packed parameter slab.
    out_ref:(block_b, 128) f32 lane-dense slab: lanes [0,out_dim)=probs, lane out_dim=value."""
    x = x_ref[...].astype(jnp.bfloat16)

    # Static, sublane-aligned slices of the parameter slab; cast to bf16 so the MXU does
    # single-pass vmatmuls (accumulation stays f32 via preferred_element_type).
    w1 = p_ref[0:in_pad, :].astype(jnp.bfloat16)                          # fc1 (+ folded b1)
    w2 = p_ref[in_pad:in_pad + LANE, :].astype(jnp.bfloat16)              # fc2 (padded 64->128)
    wh = p_ref[in_pad + LANE:in_pad + 2 * LANE, :].astype(jnp.bfloat16)   # actor|critic heads
    bias = p_ref[in_pad + 2 * LANE:in_pad + 2 * LANE + BIAS_ROWS, :]      # (8,128) f32
    b2 = bias[0:1, :]
    bh = bias[1:2, :]

    h1 = jnp.maximum(jnp.dot(x, w1, preferred_element_type=jnp.float32), 0.0)
    h2 = jnp.maximum(
        jnp.dot(h1.astype(jnp.bfloat16), w2, preferred_element_type=jnp.float32) + b2, 0.0)
    heads = jnp.dot(h2.astype(jnp.bfloat16), wh, preferred_element_type=jnp.float32) + bh

    # (1,128) lane masks, broadcast against the (block_b,128) activations.
    lane = jax.lax.broadcasted_iota(jnp.int32, (1, LANE), 1)
    actor_mask = lane < out_dim          # lanes holding actor logits
    value_mask = lane == out_dim         # lane holding the critic value

    # Softmax over the real actor lanes only (padded lanes masked to -inf / 0).
    logits = jnp.where(actor_mask, heads, -jnp.inf)
    m = jnp.max(logits, axis=-1, keepdims=True)
    e = jnp.where(actor_mask, jnp.exp(logits - m), 0.0)
    probs = e / jnp.sum(e, axis=-1, keepdims=True)   # exact divide: sum(probs) == 1

    # Single lane-dense store: probs | value | zeros.
    out_ref[...] = jnp.where(actor_mask, probs, jnp.where(value_mask, heads, 0.0))


def pack_params(params, input_dim, output_dim, hidden=HIDDEN):
    """Pack all weights/biases into one (in_pad + 2*128 + 8, 128) f32 slab (single DMA).

    Row layout:
      [0,          in_pad)       fc1 weights; row in_pad-1 holds fc1's bias (matching input
                                  lane is set to 1.0 by the wrapper)
      [in_pad,     in_pad+128)   fc2 weights (zero-padded 64 -> 128)
      [in_pad+128, in_pad+256)   fused actor|critic head weights
      [in_pad+256, in_pad+264)   bias rows: 0 = fc2 bias, 1 = actor|critic bias
    """
    in_p = _in_pad(input_dim)
    assert input_dim < in_p and hidden <= LANE and output_dim + 1 <= LANE
    w1p = (jnp.zeros((in_p, LANE), jnp.float32)
           .at[:input_dim, :hidden].set(params["w1"])
           .at[in_p - 1, :hidden].set(params["b1"][0]))            # folded fc1 bias row
    w2p = jnp.zeros((LANE, LANE), jnp.float32).at[:hidden, :hidden].set(params["w2"])
    whp = (jnp.zeros((LANE, LANE), jnp.float32)
           .at[:hidden, :output_dim].set(params["wa"])
           .at[:hidden, output_dim].set(params["wc"][:, 0]))
    bp = (jnp.zeros((BIAS_ROWS, LANE), jnp.float32)
          .at[0, :hidden].set(params["b2"][0])
          .at[1, :output_dim].set(params["ba"][0])
          .at[1, output_dim].set(params["bc"][0, 0]))
    return jnp.concatenate([w1p, w2p, whp, bp], axis=0)


def _choose_block_b(rows8):
    """rows8: batch rounded up to a multiple of 8 (one sublane tile)."""
    if rows8 <= 256:
        return rows8                       # latency path: one tile, one grid step
    # Throughput path: >= 2 grid steps so the "parallel" batch axis shards across both
    # v7x TensorCores; tiles >= ~1024 rows already sit at the HBM roofline.
    half = -(-(rows8 // 2) // 8) * 8
    return min(MAX_BLOCK_B, half)


def actor_critic_forward(x, packed_params, *, output_dim, block_b=None):
    """x: (B, input_dim) f32.  packed_params: f32 slab from pack_params.
    Returns (probs (B, output_dim), value (B, 1)), both f32."""
    B, in_dim = x.shape
    slab_rows = packed_params.shape[0]
    in_p = slab_rows - 2 * LANE - BIAS_ROWS
    assert in_dim < in_p

    rows8 = -(-B // 8) * 8
    if block_b is None:
        block_b = _choose_block_b(rows8)
    assert block_b % 8 == 0
    b_pad = -(-rows8 // block_b) * block_b

    # Row-padded, sublane-wide (NOT 128-lane-wide) input; last lane = 1.0 for folded b1.
    x_pad = (jnp.zeros((b_pad, in_p), jnp.float32)
             .at[:B, :in_dim].set(x)
             .at[:B, in_p - 1].set(1.0))

    out = pl.pallas_call(
        functools.partial(actor_critic_kernel, out_dim=output_dim, in_pad=in_p),
        out_shape=jax.ShapeDtypeStruct((b_pad, LANE), jnp.float32),
        grid=(b_pad // block_b,),
        in_specs=[
            pl.BlockSpec((block_b, in_p), lambda i: (i, 0)),
            # Constant index_map -> slab is DMA'd once and its buffer reused every step.
            pl.BlockSpec((slab_rows, LANE), lambda i: (0, 0)),
        ],
        out_specs=pl.BlockSpec((block_b, LANE), lambda i: (i, 0)),
        compiler_params=pltpu.CompilerParams(
            dimension_semantics=("parallel",),
            vmem_limit_bytes=32 * 1024 * 1024,
        ),
    )(x_pad, packed_params)

    # Latency note: per-env-step consumers (B~8) can take `out[:B]` directly and index
    # lazily to skip these two post-kernel slice dispatches.
    probs = out[:B, :output_dim]
    value = out[:B, output_dim:output_dim + 1]
    return probs, value


def init_params(key, input_dim, output_dim, hidden=HIDDEN):
    """PyTorch-Linear-style init; weights stored (in, out), biases (1, out)."""
    def linear(k, fan_in, fan_out):
        kw, kb = jax.random.split(k)
        bound = 1.0 / jnp.sqrt(fan_in)
        w = jax.random.uniform(kw, (fan_in, fan_out), jnp.float32, -bound, bound)
        b = jax.random.uniform(kb, (1, fan_out), jnp.float32, -bound, bound)
        return w, b

    k1, k2, k3, k4 = jax.random.split(key, 4)
    w1, b1 = linear(k1, input_dim, hidden)
    w2, b2 = linear(k2, hidden, hidden)
    wa, ba = linear(k3, hidden, output_dim)
    wc, bc = linear(k4, hidden, 1)
    return {"w1": w1, "b1": b1, "w2": w2, "b2": b2,
            "wa": wa, "ba": ba, "wc": wc, "bc": bc}


def reference_forward(x, p):
    h1 = jnp.maximum(x @ p["w1"] + p["b1"], 0.0)
    h2 = jnp.maximum(h1 @ p["w2"] + p["b2"], 0.0)
    logits = h2 @ p["wa"] + p["ba"]
    probs = jax.nn.softmax(logits, axis=-1)
    value = h2 @ p["wc"] + p["bc"]
    return probs, value


if __name__ == "__main__":
    # WindyGridworld: small state (input_dim=4) and 4 discrete actions.
    batch, input_dim, output_dim = 8, 4, 4

    key = jax.random.PRNGKey(0)
    kx, kp = jax.random.split(key)
    x = jax.random.normal(kx, (batch, input_dim), jnp.float32)
    params = init_params(kp, input_dim, output_dim)
    packed = pack_params(params, input_dim, output_dim)

    probs, value = jax.block_until_ready(
        actor_critic_forward(x, packed, output_dim=output_dim))

    # Correctness check against a pure-JAX f32 reference.
    ref_probs, ref_value = reference_forward(x, params)
    assert probs.shape == (batch, output_dim)
    assert value.shape == (batch, 1)
    # Tolerances account for bf16 matmul operands (f32 accumulation, f32 epilogue).
    assert jnp.allclose(probs, ref_probs, atol=2e-2, rtol=2e-2)
    assert jnp.allclose(value, ref_value, atol=2e-2, rtol=2e-2)
    # Softmax uses an exact divide in the kernel, so rows sum to 1 at f32 precision.
    assert jnp.allclose(jnp.sum(probs, axis=-1), 1.0, atol=1e-3)

    print("KERNEL_OK")
</pallas_src>

<mosaic_0001>
module attributes {stable_mosaic.version = 11 : i64} {
  func.func @actor_critic_kernel(%arg0: i32, %arg1: memref<8x8xf32, #tpu.memory_space<vmem>>, %arg2: memref<272x128xf32, #tpu.memory_space<vmem>>, %arg3: memref<8x128xf32, #tpu.memory_space<vmem>>) attributes {dimension_semantics = [#tpu.dimension_semantics<parallel>], iteration_bounds = array<i64: 1>, scalar_prefetch = 0 : i64, scratch_operands = 0 : i64, tpu.core_type = #tpu.core_type<tc>, window_params = [{transform_indices = @transform_0, window_bounds = array<i64: 8, 8>}, {pipeline_mode = #tpu.pipeline_mode<synchronous>, transform_indices = @transform_1, window_bounds = array<i64: 272, 128>}, {transform_indices = @transform_2, window_bounds = array<i64: 8, 128>}]} {
    %c0 = arith.constant 0 : index
    %c0_0 = arith.constant 0 : index
    %0 = vector.load %arg1[%c0, %c0_0] : memref<8x8xf32, #tpu.memory_space<vmem>>, vector<8x8xf32>
    %1 = arith.truncf %0 : vector<8x8xf32> to vector<8x8xbf16>
    %c0_1 = arith.constant 0 : index
    %c0_2 = arith.constant 0 : index
    %2 = vector.load %arg2[%c0_1, %c0_2] : memref<272x128xf32, #tpu.memory_space<vmem>>, vector<8x128xf32>
    %3 = arith.truncf %2 : vector<8x128xf32> to vector<8x128xbf16>
    %c8 = arith.constant 8 : index
    %c0_3 = arith.constant 0 : index
    %4 = vector.load %arg2[%c8, %c0_3] : memref<272x128xf32, #tpu.memory_space<vmem>>, vector<128x128xf32>
    %5 = arith.truncf %4 : vector<128x128xf32> to vector<128x128xbf16>
    %c136 = arith.constant 136 : index
    %c0_4 = arith.constant 0 : index
    %6 = vector.load %arg2[%c136, %c0_4] : memref<272x128xf32, #tpu.memory_space<vmem>>, vector<128x128xf32>
    %7 = arith.truncf %6 : vector<128x128xf32> to vector<128x128xbf16>
    %c264 = arith.constant 264 : index
    %c0_5 = arith.constant 0 : index
    %8 = vector.load %arg2[%c264, %c0_5] : memref<272x128xf32, #tpu.memory_space<vmem>>, vector<8x128xf32>
    %9 = vector.extract_strided_slice %8 {offsets = [0, 0], sizes = [1, 128], strides = [1, 1]} : vector<8x128xf32> to vector<1x128xf32>
    %10 = vector.extract_strided_slice %8 {offsets = [1, 0], sizes = [1, 128], strides = [1, 1]} : vector<8x128xf32> to vector<1x128xf32>
    %cst = arith.constant dense<0.000000e+00> : vector<8x128xf32>
    %11 = tpu.matmul %1, %3, %cst {dimension_numbers = #tpu.dot_dimension_numbers<[1], [0], [0], [1], [0, 0, 1, 1], [], []>} : vector<8x8xbf16>, vector<8x128xbf16>, vector<8x128xf32> -> vector<8x128xf32>
    %cst_6 = arith.constant 0.000000e+00 : f32
    %12 = vector.broadcast %cst_6 : f32 to vector<8x128xf32>
    %13 = arith.maximumf %11, %12 : vector<8x128xf32>
    %14 = arith.truncf %13 : vector<8x128xf32> to vector<8x128xbf16>
    %cst_7 = arith.constant dense<0.000000e+00> : vector<8x128xf32>
    %15 = tpu.matmul %14, %5, %cst_7 {dimension_numbers = #tpu.dot_dimension_numbers<[1], [0], [0], [1], [0, 0, 1, 1], [], []>} : vector<8x128xbf16>, vector<128x128xbf16>, vector<8x128xf32> -> vector<8x128xf32>
    %16 = vector.broadcast %9 : vector<1x128xf32> to vector<8x128xf32>
    %17 = arith.addf %15, %16 : vector<8x128xf32>
    %cst_8 = arith.constant 0.000000e+00 : f32
    %18 = vector.broadcast %cst_8 : f32 to vector<8x128xf32>
    %19 = arith.maximumf %17, %18 : vector<8x128xf32>
    %20 = arith.truncf %19 : vector<8x128xf32> to vector<8x128xbf16>
    %cst_9 = arith.constant dense<0.000000e+00> : vector<8x128xf32>
    %21 = tpu.matmul %20, %7, %cst_9 {dimension_numbers = #tpu.dot_dimension_numbers<[1], [0], [0], [1], [0, 0, 1, 1], [], []>} : vector<8x128xbf16>, vector<128x128xbf16>, vector<8x128xf32> -> vector<8x128xf32>
    %22 = vector.broadcast %10 : vector<1x128xf32> to vector<8x128xf32>
    %23 = arith.addf %21, %22 : vector<8x128xf32>
    %24 = tpu.iota {dimensions = array<i32: 1>} : vector<1x128xi32>
    %c4_i32 = arith.constant 4 : i32
    %25 = vector.broadcast %c4_i32 : i32 to vector<1x128xi32>
    %26 = arith.cmpi slt, %24, %25 : vector<1x128xi32>
    %c4_i32_10 = arith.constant 4 : i32
    %27 = vector.broadcast %c4_i32_10 : i32 to vector<1x128xi32>
    %28 = arith.cmpi eq, %24, %27 : vector<1x128xi32>
    %cst_11 = arith.constant 0xFF800000 : f32
    %29 = vector.shape_cast %26 : vector<1x128xi1> to vector<1x128xi1>
    %30 = vector.broadcast %29 : vector<1x128xi1> to vector<8x128xi1>
    %31 = vector.broadcast %cst_11 : f32 to vector<8x128xf32>
    %32 = arith.select %30, %23, %31 : vector<8x128xi1>, vector<8x128xf32>
    %cst_12 = arith.constant dense<0xFF800000> : vector<8xf32>
    %33 = vector.multi_reduction <maximumf>, %32, %cst_12 [1] : vector<8x128xf32> to vector<8xf32>
    %34 = vector.shape_cast %33 : vector<8xf32> to vector<8x1xf32>
    %35 = vector.broadcast %34 : vector<8x1xf32> to vector<8x128xf32>
    %36 = arith.subf %32, %35 : vector<8x128xf32>
    %37 = math.exp %36 : vector<8x128xf32>
    %cst_13 = arith.constant 0.000000e+00 : f32
    %38 = vector.shape_cast %26 : vector<1x128xi1> to vector<1x128xi1>
    %39 = vector.broadcast %38 : vector<1x128xi1> to vector<8x128xi1>
    %40 = vector.broadcast %cst_13 : f32 to vector<8x128xf32>
    %41 = arith.select %39, %37, %40 : vector<8x128xi1>, vector<8x128xf32>
    %cst_14 = arith.constant dense<0.000000e+00> : vector<8xf32>
    %42 = vector.multi_reduction <add>, %41, %cst_14 [1] : vector<8x128xf32> to vector<8xf32>
    %43 = vector.shape_cast %42 : vector<8xf32> to vector<8x1xf32>
    %44 = vector.broadcast %43 : vector<8x1xf32> to vector<8x128xf32>
    %45 = arith.divf %41, %44 : vector<8x128xf32>
    %cst_15 = arith.constant 0.000000e+00 : f32
    %46 = vector.shape_cast %28 : vector<1x128xi1> to vector<1x128xi1>
    %47 = vector.broadcast %46 : vector<1x128xi1> to vector<8x128xi1>
    %48 = vector.broadcast %cst_15 : f32 to vector<8x128xf32>
    %49 = arith.select %47, %23, %48 : vector<8x128xi1>, vector<8x128xf32>
    %50 = vector.shape_cast %26 : vector<1x128xi1> to vector<1x128xi1>
    %51 = vector.broadcast %50 : vector<1x128xi1> to vector<8x128xi1>
    %52 = arith.select %51, %45, %49 : vector<8x128xi1>, vector<8x128xf32>
    %c0_16 = arith.constant 0 : index
    %c0_17 = arith.constant 0 : index
    %53 = vector.load %arg3[%c0_16, %c0_17] : memref<8x128xf32, #tpu.memory_space<vmem>>, vector<8x128xf32>
    tpu.vector_store %arg3[%c0_16, %c0_17], %52 {strides = array<i32>} : memref<8x128xf32, #tpu.memory_space<vmem>>, vector<8x128xf32>,
    return
  }
  func.func @transform_0(%arg0: i32) -> (i32, i32) {
    %c0_i32 = arith.constant 0 : i32
    %c0_i32_0 = arith.constant 0 : i32
    return %arg0, %c0_i32 : i32, i32
  }
  func.func @transform_1(%arg0: i32) -> (i32, i32) {
    %c0_i32 = arith.constant 0 : i32
    %c0_i32_0 = arith.constant 0 : i32
    %c0_i32_1 = arith.constant 0 : i32
    return %c0_i32, %c0_i32_0 : i32, i32
  }
  func.func @transform_2(%arg0: i32) -> (i32, i32) {
    %c0_i32 = arith.constant 0 : i32
    %c0_i32_0 = arith.constant 0 : i32
    return %arg0, %c0_i32 : i32, i32
  }
}

</mosaic_0001>

<bundles_post_ra>
// kernel: tpu_custom_call.1
= control target key start
LH: loop header
LB: loop body
LE: loop exit
PB: predicated region body
PF: predicated region fallthrough
CT: control target
= control target key end

     0   :  { %7 = vsyncpa [#allocation3], 0  ;;  %s511_s0 = inlined_call_operand.hbm [shape: f32[8,8], index: 0, kind: input, shape index: {}]   ;;  %s512_s1 = inlined_call_operand.hbm [shape: f32[272,128], index: 1, kind: input, shape index: {}]   ;;  %s513_s2 = inlined_call_operand.hbm [shape: f32[8,128], index: 2, kind: output, shape index: {}]  }
   0x1   :  { %8 = vsyncpa [#allocation6], 0 }
   0x2   :  { %9 = vsyncpa [#allocation4], 0  ;;  %s420_s9 = smov [#allocation2]   ;;  %s421_s11 = smov [#allocation5]  }
   0x3   :  { %s16_s10 = sshll.u32 %s420_s9, 4  ;;  %s25_s12 = sshll.u32 %s421_s11, 4  ;;  %s17_s10 = int_to_ptr.vmem [resolvable:$true] %s16_s10  ;;  %s442_s12 = int_to_ptr.vmem [resolvable:$true] %s25_s12 }
   0x4   :  { %s348_s15 = scalar_lea.hbm %s511_s0, 128 }
   0x5   :  { %p349_p0 = scmp.ne.s32.totalorder %s511_s0, %s348_s15  ;;  %p352_p1 = scmp.lt.u32.totalorder %s348_s15, %s511_s0 }
   0x7   :  { %p354_p2 = pnand %p352_p1, %p349_p0 }
   0x9   :  { %357 = shalt.err (!%p354_p2)
}
   0xa   :  { %s358_s20 = scalar_lea.vmem %s17_s10, 128  ;;  %p363_p4 = scmp.lt.s32.totalorder %s17_s10, %s17_s10 }
   0xb   :  { %p359_p3 = scmp.ne.s32.totalorder %s17_s10, %s358_s20  ;;  %p364_p5 = scmp.lt.s32.totalorder %s358_s20, %s358_s20 }
   0xd   :  { %p365_p6 = por %p364_p5, %p363_p4 }
   0xf   :  { %p366_p7 = pnand %p365_p6, %p359_p3 }
  0x11   :  { %369 = shalt.err (!%p366_p7)
}
  0x12   :  { %19 = dma.hbm_to_vmem [thread:$0]  %s511_s0, 128, %s17_s10, [#allocation3]  }
  0x13   :  { %s370_s25 = scalar_lea.hbm %s512_s1, 4352 }
  0x14   :  { %p371_p8 = scmp.ne.s32.totalorder %s512_s1, %s370_s25  ;;  %p374_p9 = scmp.lt.u32.totalorder %s370_s25, %s512_s1 }
  0x16   :  { %p376_p10 = pnand %p374_p9, %p371_p8 }
  0x18   :  { %379 = shalt.err (!%p376_p10)
}
  0x19   :  { %s380_s30 = scalar_lea.vmem %s442_s12, 4352  ;;  %p385_p12 = scmp.lt.s32.totalorder %s442_s12, %s442_s12 }
  0x1a   :  { %p381_p11 = scmp.ne.s32.totalorder %s442_s12, %s380_s30  ;;  %p386_p13 = scmp.lt.s32.totalorder %s380_s30, %s380_s30 }
  0x1c   :  { %p387_p0 = por %p386_p13, %p385_p12 }
  0x1e   :  { %p388_p1 = pnand %p387_p0, %p381_p11 }
  0x20   :  { %391 = shalt.err (!%p388_p1)
}
  0x21   :  { %s422_s0 = smov 128   ;;  %s423_s3 = smov 8  }
  0x22   :  { %31 = dma.hbm_to_vmem [thread:$0]  %s512_s1, 4352, %s442_s12, [#allocation6], %s422_s0, %s422_s0, %s423_s3  }
  0x23   :  { %414 = dma.done.wait [#allocation3], 128  }
  0x24   :  { %415 = vsyncadd [#allocation3], 4294967168 }
  0x25   :  { %416 = dma.done.wait [#allocation6], 4352  }
  0x26   :  { %417 = vsyncadd [#allocation6], 4294962944  ;;  %v424_v0 = vmov 0.0   ;;  %vm425_vm0 = vmmov 0   ;;  %v41_v1 = vld [vmem:[#allocation5] sm:$0xff]  ;;  %vm96_vm1 = vcmask 1043456   ;;  %v142_v60 = vlaneseq }
  0x27   :  { %291 = vmatprep.subr.bf16.mxu0 %v424_v0  ;;  %293 = vmatprep.mubr.msk.bf16.mxu0 %vm425_vm0, %v424_v0  ;;  %v39_v2 = vld [vmem:[#allocation2] sm:$0xff]  ;;  %v43_v3 = vld [vmem:[#allocation5 + $0x8] sm:$0xff]  ;;  %v42_v4 = vpack.c.bf16 %v41_v1, %v41_v1  ;;  %v44_v5 = vld [vmem:[#allocation5 + $0x10] sm:$0xff]  ;;  %vm92_vm2 = vcmask 64512   ;;  %s426_s1 = smov [#allocation7]  }
  0x28   :  { %297 = vmatprep.subr.bf16.mxu1 %v424_v0  ;;  %313 = vmatprep.mubr.msk.bf16.mxu1 %vm425_vm0, %v424_v0  ;;  %v45_v6 = vld [vmem:[#allocation5 + $0x18] sm:$0xff]  ;;  %v46_v7 = vld [vmem:[#allocation5 + $0x20] sm:$0xff]  ;;  %v59_v8 = vpack.c.bf16 %v44_v5, %v43_v3  ;;  %v40_v10 = vpack.c.bf16 %v39_v2, %v39_v2  ;;  %v47_v12 = vld [vmem:[#allocation5 + $0x28] sm:$0xff]  ;;  %v143_v61 = vshrl.u32 %v142_v60, 7  ;;  %s260_s6 = sshll.u32 %s426_s1, 4  ;;  %s261_s6 = int_to_ptr.vmem [resolvable:$true] %s260_s6 }
  0x29   :  { %v98_v9 = vsel %vm96_vm1, %v42_v4, 0  ;;  %v60_v11 = vpack.c.bf16 %v46_v7, %v45_v6  ;;  %v48_v13 = vld [vmem:[#allocation5 + $0x30] sm:$0xff]  ;;  %v49_v15 = vld [vmem:[#allocation5 + $0x38] sm:$0xff]  ;;  %v50_v16 = vld [vmem:[#allocation5 + $0x40] sm:$0xff]  ;;  %s392_s7 = scalar_lea.vmem %s261_s6, 128  ;;  %p397_p3 = scmp.lt.s32.totalorder %s261_s6, %s261_s6 }
  0x2a   :  { %292 = vmatpush3.bf16.msra.mxu0 %v98_v9  ;;  %298 = vmatpush3.bf16.msra.mxu1 %v59_v8  ;;  %v61_v14 = vpack.c.bf16 %v48_v13, %v47_v12  ;;  %v62_v17 = vpack.c.bf16 %v50_v16, %v49_v15  ;;  %v51_v18 = vld [vmem:[#allocation5 + $0x48] sm:$0xff]  ;;  %v52_v19 = vld [vmem:[#allocation5 + $0x50] sm:$0xff]  ;;  %v53_v21 = vld [vmem:[#allocation5 + $0x58] sm:$0xff]  ;;  %v144_v62 = vsub.s32 0, %v143_v61  ;;  %v190_v9 = vsub.s32 1, %v143_v61  ;;  %p393_p2 = scmp.ne.s32.totalorder %s261_s6, %s392_s7  ;;  %p398_p4 = scmp.lt.s32.totalorder %s392_s7, %s392_s7 }
  0x2b   :  { %299 = vmatprep.subr.bf16.mxu1 %v424_v0  ;;  %317 = vmatprep.subr.bf16.mxu0 %v424_v0  ;;  %v63_v20 = vpack.c.bf16 %v52_v19, %v51_v18  ;;  %v54_v22 = vld [vmem:[#allocation5 + $0x60] sm:$0xff]  ;;  %v55_v24 = vld [vmem:[#allocation5 + $0x68] sm:$0xff]  ;;  %v56_v25 = vld [vmem:[#allocation5 + $0x70] sm:$0xff] }
  0x2c   :  { %v64_v23 = vpack.c.bf16 %v54_v22, %v53_v21  ;;  %v65_v26 = vpack.c.bf16 %v56_v25, %v55_v24  ;;  %v57_v27 = vld [vmem:[#allocation5 + $0x78] sm:$0xff]  ;;  %v58_v28 = vld [vmem:[#allocation5 + $0x80] sm:$0xff]  ;;  %v67_v30 = vld [vmem:[#allocation5 + $0x88] sm:$0xff]  ;;  %p399_p5 = por %p398_p4, %p397_p3 }
  0x2d   :  { %294 = vmatmul.mubr.msk.bf16.vlgmr.msra.gmra.mrb[0].mxu0 %vm92_vm2, %v40_v10  ;;  %v66_v29 = vpack.c.bf16 %v58_v28, %v57_v27  ;;  %v68_v31 = vld [vmem:[#allocation5 + $0x90] sm:$0xff]  ;;  %v69_v32 = vld [vmem:[#allocation5 + $0x98] sm:$0xff]  ;;  %v70_v34 = vld [vmem:[#allocation5 + $0xa0] sm:$0xff]  ;;  %v233_v10 = vand.u32 127, %v142_v60 }
  0x2e   :  { %300 = vmatpush3.bf16.msra.mxu1 %v60_v11  ;;  %333 = vmatprep.mubr.msk.bf16.mxu0 %vm425_vm0, %v424_v0  ;;  %v83_v33 = vpack.c.bf16 %v68_v31, %v67_v30  ;;  %v84_v35 = vpack.c.bf16 %v70_v34, %v69_v32  ;;  %v71_v36 = vld [vmem:[#allocation5 + $0xa8] sm:$0xff]  ;;  %v72_v37 = vld [vmem:[#allocation5 + $0xb0] sm:$0xff]  ;;  %v73_v39 = vld [vmem:[#allocation5 + $0xb8] sm:$0xff]  ;;  %p400_p6 = pnand %p399_p5, %p393_p2 }
  0x2f   :  { %301 = vmatprep.subr.bf16.mxu1 %v424_v0  ;;  %v85_v38 = vpack.c.bf16 %v72_v37, %v71_v36  ;;  %v74_v40 = vld [vmem:[#allocation5 + $0xc0] sm:$0xff]  ;;  %v75_v42 = vld [vmem:[#allocation5 + $0xc8] sm:$0xff]  ;;  %v76_v43 = vld [vmem:[#allocation5 + $0xd0] sm:$0xff]  ;;  %vm235_vm3 = vcmp.eq.s32.totalorder %v233_v10, 4  ;;  %vm234_vm4 = vcmp.lt.s32.totalorder %v233_v10, 4 }
  0x30   :  { %318 = vmatpush3.bf16.msra.mxu0 %v83_v33  ;;  %v86_v41 = vpack.c.bf16 %v74_v40, %v73_v39  ;;  %v87_v44 = vpack.c.bf16 %v76_v43, %v75_v42  ;;  %v77_v45 = vld [vmem:[#allocation5 + $0xd8] sm:$0xff]  ;;  %v78_v46 = vld [vmem:[#allocation5 + $0xe0] sm:$0xff]  ;;  %v79_v54 = vld [vmem:[#allocation5 + $0xe8] sm:$0xff] }
  0x31   :  { %319 = vmatprep.subr.bf16.mxu0 %v424_v0  ;;  %v88_v47 = vpack.c.bf16 %v78_v46, %v77_v45  ;;  %v80_v55 = vld [vmem:[#allocation5 + $0xf0] sm:$0xff]  ;;  %v81_v57 = vld [vmem:[#allocation5 + $0xf8] sm:$0xff]  ;;  %v82_v58 = vld [vmem:[#allocation5 + $0x100] sm:$0xff] }
  0x32   :  { %302 = vmatpush3.bf16.msra.mxu1 %v61_v14  ;;  %v89_v56 = vpack.c.bf16 %v80_v55, %v79_v54  ;;  %v90_v59 = vpack.c.bf16 %v82_v58, %v81_v57  ;;  %v91_v63 = vld [vmem:[#allocation5 + $0x108] sm:$0xff] }
  0x33   :  { %303 = vmatprep.subr.bf16.mxu1 %v424_v0  ;;  %v145_v1 = vrot.slane %v91_v63, %v144_v62 }
  0x34   :  { %320 = vmatpush3.bf16.msra.mxu0 %v84_v35 }
  0x35   :  { %321 = vmatprep.subr.bf16.mxu0 %v424_v0 }
  0x36   :  { %304 = vmatpush3.bf16.msra.mxu1 %v62_v17 }
  0x37   :  { %305 = vmatprep.subr.bf16.mxu1 %v424_v0 }
  0x38   :  { %322 = vmatpush3.bf16.msra.mxu0 %v85_v38 }
  0x39   :  { %323 = vmatprep.subr.bf16.mxu0 %v424_v0 }
  0x3a   :  { %306 = vmatpush3.bf16.msra.mxu1 %v63_v20 }
  0x3b   :  { %307 = vmatprep.subr.bf16.mxu1 %v424_v0 }
  0x3c   :  { %324 = vmatpush3.bf16.msra.mxu0 %v86_v41 }
  0x3d   :  { %325 = vmatprep.subr.bf16.mxu0 %v424_v0 }
  0x3e   :  { %308 = vmatpush3.bf16.msra.mxu1 %v64_v23 }
  0x3f   :  { %309 = vmatprep.subr.bf16.mxu1 %v424_v0 }
  0x40   :  { %326 = vmatpush3.bf16.msra.mxu0 %v87_v44 }
  0x41   :  { %327 = vmatprep.subr.bf16.mxu0 %v424_v0 }
  0x42   :  { %310 = vmatpush3.bf16.msra.mxu1 %v65_v26 }
  0x43   :  { %311 = vmatprep.subr.bf16.mxu1 %v424_v0 }
  0x44   :  { %328 = vmatpush3.bf16.msra.mxu0 %v88_v47 }
  0x45   :  { %329 = vmatprep.subr.bf16.mxu0 %v424_v0 }
  0x46   :  { %312 = vmatpush3.bf16.msra.mxu1 %v66_v29 }
  0x48   :  { %330 = vmatpush3.bf16.msra.mxu0 %v89_v56 }
  0x49   :  { %331 = vmatprep.subr.bf16.mxu0 %v424_v0  ;;  %v191_v0 = vrot.slane %v91_v63, %v190_v9 }
  0x4c   :  { %332 = vmatpush3.bf16.msra.mxu0 %v90_v59 }
 0x100   :  { %v134_v48 = vpop.f32.mrb[0].mxu0 }
 0x101   :  { %v140_v49 = vmax.f32 %v134_v48, 0.0  ;;  %v295_v50 = vpop.f32.mrb[1].mxu0 }
 0x102   :  { %v137_v51 = vpop.f32.mrb[2].mxu0 }
 0x103   :  { %v141_v52 = vpack.c.bf16 %v140_v49, %v140_v49  ;;  %v296_v53 = vpop.f32.mrb[3].mxu0 }
 0x105   :  { %314 = vmatmul.mubr.bf16.vlgmr.msra.gmra.mrb[0].mxu1 %v141_v52 }
 0x1d8   :  { %v180_v2 = vpop.f32.mrb[0].mxu1 }
 0x1d9   :  { %v181_v3 = vadd.f32 %v180_v2, %v145_v1  ;;  %v315_v4 = vpop.f32.mrb[1].mxu1 }
 0x1da   :  { %v183_v5 = vpop.f32.mrb[2].mxu1 }
 0x1db   :  { %v186_v6 = vmax.f32 %v181_v3, 0.0  ;;  %v316_v7 = vpop.f32.mrb[3].mxu1 }
 0x1dd   :  { %v187_v8 = vpack.c.bf16 %v186_v6, %v186_v6 }
 0x1df   :  { %334 = vmatmul.mubr.bf16.vlgmr.msra.gmra.mrb[4].mxu0 %v187_v8 }
 0x2b2   :  { %v226_v11 = vpop.f32.mrb[4].mxu0 }
 0x2b3   :  { %v227_v12 = vadd.f32 %v226_v11, %v191_v0  ;;  %v335_v13 = vpop.f32.mrb[5].mxu0 }
 0x2b4   :  { %v229_v14 = vpop.f32.mrb[6].mxu0 }
 0x2b5   :  { %v251_v15 = vsel %vm235_vm3, %v227_v12, 0.0  ;;  %v336_v16 = vpop.f32.mrb[7].mxu0  ;;  %v238_v17 = vsel %vm234_vm4, %v227_v12, -inf }
 0x2b6   :  { %239 = vmax.xlane.f32.xlu0 %v238_v17 }
 0x343   :  { %v240_v18 = vpop.xlane.xlu0 %239 }
 0x344   :  { %v241_v19 = vsub.f32 %v238_v17, %v240_v18 }
 0x346   :  { %v242_v20 = vmul.f32 1.442695, %v241_v19 }
 0x348   :  { %344 = vpow2.f32 %v242_v20 }
 0x352   :  { %v345_v21 = vpop.eup %344 }
 0x353   :  { %v244_v22 = vsel %vm234_vm4, %v345_v21, 0.0 }
 0x354   :  { %245 = vadd.xlane.f32.xlu0 %v244_v22 }
 0x3e1   :  { %v246_v23 = vpop.xlane.xlu0 %245 }
 0x3e2   :  { %346 = vrcp.f32 %v246_v23 }
 0x3ec   :  { %v347_v24 = vpop.eup %346 }
 0x3ed   :  { %v248_v25 = vmul.f32 %v347_v24, %v244_v22 }
 0x3ef   :  { %v252_v26 = vsel %vm234_vm4, %v248_v25, %v251_v15 }
 0x3f0   :  { %253 = vst [vmem:[#allocation7] sm:$0xff] %v252_v26 }
 0x3f1   :  { %403 = shalt.err (!%p400_p6)
}
 0x3f2   :  { %s404_s10 = scalar_lea.hbm %s513_s2, 128 }
 0x3f3   :  { %p405_p7 = scmp.ne.s32.totalorder %s513_s2, %s404_s10  ;;  %p408_p8 = scmp.lt.u32.totalorder %s404_s10, %s513_s2 }
 0x3f5   :  { %p410_p9 = pnand %p408_p8, %p405_p7 }
 0x3f7   :  { %413 = shalt.err (!%p410_p9)
}
 0x3f8   :  { %263 = dma.vmem_to_hbm [thread:$0]  %s261_s6, 128, %s513_s2, [#allocation4]  }
 0x3f9   :  { %418 = dma.done.wait [#allocation4], 128  }
 0x3fa   :  { %419 = vsyncadd [#allocation4], 4294967168 }
 0x3fb   :  { %267 = vsyncpa [#allocation3], 1 }
 0x3fc   :  { %268 = vsyncpa [#allocation6], 1 }
 0x3fd   :  { %269 = vsyncpa [#allocation4], 1 }

</bundles_post_ra>
